<compile_context>
chip_gen: v5e
topology: v5e:2x2
jax: 0.10.0
libtpu: 0.0.40
codegen_flags: <defaults>
</compile_context>

<pallas_src>
import functools

import jax
import jax.numpy as jnp
from jax.experimental import pallas as pl
from jax.experimental.pallas import tpu as pltpu

INPUT_SIZE = 42  # forward hard-codes x.view(-1, 42)


def _mlp_kernel(x_ref, w1_ref, b1_ref, w2_ref, b2_ref, o_ref):
    # x_ref:  (TB, IN)     w1_ref: (IN, H)   b1_ref: (1, H)
    # w2_ref: (H, OUT)     b2_ref: (1, OUT)  o_ref:  (TB, OUT)
    x = x_ref[...]
    # linear1: x @ W1 + b1 (weights pre-transposed -> canonical MXU layout), ReLU
    h = jnp.dot(x, w1_ref[...], preferred_element_type=jnp.float32) + b1_ref[...]
    h = jnp.maximum(h, 0.0)
    # linear2: h @ W2 + b2
    o = jnp.dot(h, w2_ref[...], preferred_element_type=jnp.float32) + b2_ref[...]
    o_ref[...] = o.astype(o_ref.dtype)


def prepare_params(w1, b1, w2, b2):
    """One-time parameter prep (do this when params are created/updated, NOT per
    forward call): transpose PyTorch-layout (out, in) weights to (in, out) and
    make biases 2-D so the kernel never transposes or reshapes anything."""
    return w1.T, b1.reshape(1, -1), w2.T, b2.reshape(1, -1)


def linear_qnet_forward(x, w1t, b1_2d, w2t, b2_2d, *,
                        batch_tile=1024, small_batch_rows=4096):
    """relu(x.view(-1,42) @ W1.T + b1) @ W2.T + b2  (params from prepare_params)."""
    x2d = x.reshape(-1, INPUT_SIZE)
    B = x2d.shape[0]
    OUT = w2t.shape[1]
    out_shape = jax.ShapeDtypeStruct((B, OUT), x2d.dtype)

    if B <= small_batch_rows:
        # Small/medium batch: no grid, no pipeline -- whole arrays live in VMEM
        # (4096 rows of f32[42] is ~0.7 MiB, far under the VMEM budget).
        vmem = pl.BlockSpec(memory_space=pltpu.MemorySpace.VMEM)
        return pl.pallas_call(
            _mlp_kernel,
            out_shape=out_shape,
            in_specs=[vmem, vmem, vmem, vmem, vmem],
            out_specs=vmem,
        )(x2d, w1t, b1_2d, w2t, b2_2d)

    # Large-batch path: stream batch tiles through VMEM. Weight/bias blocks use a
    # constant index_map so they are not re-DMA'd across grid iterations, and the
    # batch axis is "parallel" so Mosaic may shard tiles across TensorCores (v7x).
    # pl.cdiv handles batch sizes that are not a multiple of the tile (Pallas
    # masks the ragged edge block's writes).
    return pl.pallas_call(
        _mlp_kernel,
        out_shape=out_shape,
        grid=(pl.cdiv(B, batch_tile),),
        in_specs=[
            pl.BlockSpec((batch_tile, INPUT_SIZE), lambda i: (i, 0)),
            pl.BlockSpec(w1t.shape, lambda i: (0, 0)),
            pl.BlockSpec(b1_2d.shape, lambda i: (0, 0)),
            pl.BlockSpec(w2t.shape, lambda i: (0, 0)),
            pl.BlockSpec(b2_2d.shape, lambda i: (0, 0)),
        ],
        out_specs=pl.BlockSpec((batch_tile, OUT), lambda i: (i, 0)),
        compiler_params=pltpu.CompilerParams(
            dimension_semantics=("parallel",)
        ),
    )(x2d, w1t, b1_2d, w2t, b2_2d)


def init_params(key, input_size, hidden_size, output_size):
    """Deterministic init mimicking nn.Linear's U(-1/sqrt(fan_in), 1/sqrt(fan_in))."""
    k1, k2, k3, k4 = jax.random.split(key, 4)
    bound1 = 1.0 / jnp.sqrt(jnp.float32(input_size))
    bound2 = 1.0 / jnp.sqrt(jnp.float32(hidden_size))
    w1 = jax.random.uniform(k1, (hidden_size, input_size), jnp.float32, -bound1, bound1)
    b1 = jax.random.uniform(k2, (hidden_size,), jnp.float32, -bound1, bound1)
    w2 = jax.random.uniform(k3, (output_size, hidden_size), jnp.float32, -bound2, bound2)
    b2 = jax.random.uniform(k4, (output_size,), jnp.float32, -bound2, bound2)
    return w1, b1, w2, b2


def _reference(x, w1, b1, w2, b2):
    return jnp.maximum(x.reshape(-1, INPUT_SIZE) @ w1.T + b1, 0.0) @ w2.T + b2


if __name__ == "__main__":
    HIDDEN_SIZE = 64
    OUTPUT_SIZE = 4
    BATCH = 8

    key = jax.random.PRNGKey(0)
    kx, kxl, kp = jax.random.split(key, 3)
    w1, b1, w2, b2 = init_params(kp, INPUT_SIZE, HIDDEN_SIZE, OUTPUT_SIZE)
    # Hoisted, one-time param prep (pre-transpose weights, 2-D biases).
    w1t, b1_2d, w2t, b2_2d = prepare_params(w1, b1, w2, b2)

    fwd_small = jax.jit(linear_qnet_forward)
    # Force the streaming (grid) path regardless of batch size, tile = 512 rows.
    fwd_grid = jax.jit(functools.partial(
        linear_qnet_forward, batch_tile=512, small_batch_rows=0))

    # --- small-batch path (no-grid, pure-VMEM) ---
    x = jax.random.normal(kx, (BATCH, INPUT_SIZE), jnp.float32)
    out = jax.block_until_ready(fwd_small(x, w1t, b1_2d, w2t, b2_2d))
    ref = _reference(x, w1, b1, w2, b2)
    assert out.shape == (BATCH, OUTPUT_SIZE)
    assert jnp.allclose(out, ref, atol=1e-5, rtol=1e-5)

    # --- batched / streaming path (grid over batch tiles, weights pinned in VMEM) ---
    BIG_BATCH = 2048
    xl = jax.random.normal(kxl, (BIG_BATCH, INPUT_SIZE), jnp.float32)
    out_l = jax.block_until_ready(fwd_grid(xl, w1t, b1_2d, w2t, b2_2d))
    ref_l = _reference(xl, w1, b1, w2, b2)
    assert out_l.shape == (BIG_BATCH, OUTPUT_SIZE)
    assert jnp.allclose(out_l, ref_l, atol=1e-5, rtol=1e-5)

    print("KERNEL_OK")
</pallas_src>

<mosaic_0001>
module attributes {stable_mosaic.version = 11 : i64} {
  func.func @_mlp_kernel(%arg0: memref<8x42xf32, #tpu.memory_space<vmem>>, %arg1: memref<42x64xf32, #tpu.memory_space<vmem>>, %arg2: memref<1x64xf32, #tpu.memory_space<vmem>>, %arg3: memref<64x4xf32, #tpu.memory_space<vmem>>, %arg4: memref<1x4xf32, #tpu.memory_space<vmem>>, %arg5: memref<8x4xf32, #tpu.memory_space<vmem>>) attributes {dimension_semantics = [], scalar_prefetch = 0 : i64, scratch_operands = 0 : i64, tpu.core_type = #tpu.core_type<tc>} {
    %c0 = arith.constant 0 : index
    %c0_0 = arith.constant 0 : index
    %0 = vector.load %arg0[%c0, %c0_0] : memref<8x42xf32, #tpu.memory_space<vmem>>, vector<8x42xf32>
    %c0_1 = arith.constant 0 : index
    %c0_2 = arith.constant 0 : index
    %1 = vector.load %arg1[%c0_1, %c0_2] : memref<42x64xf32, #tpu.memory_space<vmem>>, vector<42x64xf32>
    %cst = arith.constant dense<0.000000e+00> : vector<8x64xf32>
    %2 = tpu.matmul %0, %1, %cst {dimension_numbers = #tpu.dot_dimension_numbers<[1], [0], [0], [1], [0, 0, 1, 1], [], []>} : vector<8x42xf32>, vector<42x64xf32>, vector<8x64xf32> -> vector<8x64xf32>
    %c0_3 = arith.constant 0 : index
    %c0_4 = arith.constant 0 : index
    %3 = vector.load %arg2[%c0_3, %c0_4] : memref<1x64xf32, #tpu.memory_space<vmem>>, vector<1x64xf32>
    %4 = vector.broadcast %3 : vector<1x64xf32> to vector<8x64xf32>
    %5 = arith.addf %2, %4 : vector<8x64xf32>
    %cst_5 = arith.constant 0.000000e+00 : f32
    %6 = vector.broadcast %cst_5 : f32 to vector<8x64xf32>
    %7 = arith.maximumf %5, %6 : vector<8x64xf32>
    %c0_6 = arith.constant 0 : index
    %c0_7 = arith.constant 0 : index
    %8 = vector.load %arg3[%c0_6, %c0_7] : memref<64x4xf32, #tpu.memory_space<vmem>>, vector<64x4xf32>
    %cst_8 = arith.constant dense<0.000000e+00> : vector<8x4xf32>
    %9 = tpu.matmul %7, %8, %cst_8 {dimension_numbers = #tpu.dot_dimension_numbers<[1], [0], [0], [1], [0, 0, 1, 1], [], []>} : vector<8x64xf32>, vector<64x4xf32>, vector<8x4xf32> -> vector<8x4xf32>
    %c0_9 = arith.constant 0 : index
    %c0_10 = arith.constant 0 : index
    %10 = vector.load %arg4[%c0_9, %c0_10] : memref<1x4xf32, #tpu.memory_space<vmem>>, vector<1x4xf32>
    %11 = vector.broadcast %10 : vector<1x4xf32> to vector<8x4xf32>
    %12 = arith.addf %9, %11 : vector<8x4xf32>
    %c0_11 = arith.constant 0 : index
    %c0_12 = arith.constant 0 : index
    %13 = vector.load %arg5[%c0_11, %c0_12] : memref<8x4xf32, #tpu.memory_space<vmem>>, vector<8x4xf32>
    tpu.vector_store %arg5[%c0_11, %c0_12], %12 {strides = array<i32>} : memref<8x4xf32, #tpu.memory_space<vmem>>, vector<8x4xf32>,
    return
  }
}

</mosaic_0001>

<bundles_post_ra>
// kernel: linear_qnet_forward.1
= control target key start
LH: loop header
LB: loop body
LE: loop exit
PB: predicated region body
PF: predicated region fallthrough
CT: control target
= control target key end

     0   :  { %vm35_vm0 = vcmask 1041408   ;;  %vm31_vm1 = vcmask 343040   ;;  %vm72_vm2 = vcmask 523264   ;;  %vm96_vm3 = vcmask 31744   ;;  %s191_s1 = inlined_call_operand.vmem [shape: f32[42,64], index: 1, kind: input, shape index: {}]   ;;  %s192_s3 = inlined_call_operand.vmem [shape: f32[64,4], index: 3, kind: input, shape index: {}]   ;;  %s193_s2 = inlined_call_operand.vmem [shape: f32[1,64], index: 2, kind: input, shape index: {}]   ;;  %s194_s0 = inlined_call_operand.vmem [shape: f32[8,42], index: 0, kind: input, shape index: {}]   ;;  %s195_s4 = inlined_call_operand.vmem [shape: f32[1,4], index: 4, kind: input, shape index: {}]   ;;  %s196_s5 = inlined_call_operand.vmem [shape: f32[8,4], index: 5, kind: output, shape index: {}]  }
   0x1   :  { %v26_v0 = vld [vmem:[%s191_s1 + $0x28] sm:$0x3]  ;;  %v25_v1 = vld [vmem:[%s191_s1 + $0x20] sm:$0xff]  ;;  %v24_v2 = vld [vmem:[%s191_s1 + $0x18] sm:$0xff] }
   0x2   :  { %102 = vmatpush.msk.msra.mxu0 %vm35_vm0, %v26_v0  ;;  %v67_v3 = vld [vmem:[%s192_s3 + $0x38] sm:$0xff]  ;;  %v66_v4 = vld [vmem:[%s192_s3 + $0x30] sm:$0xff]  ;;  %v65_v6 = vld [vmem:[%s192_s3 + $0x28] sm:$0xff] }
   0x3   :  { %84 = vmatpush.msra.mxu1 %v67_v3  ;;  %v23_v5 = vld [vmem:[%s191_s1 + $0x10] sm:$0xff]  ;;  %v22_v7 = vld [vmem:[%s191_s1 + $0x8] sm:$0xff]  ;;  %v64_v8 = vld [vmem:[%s192_s3 + $0x20] sm:$0xff] }
   0x4   :  { %50 = vmatpush.msra.mxu0 %v25_v1  ;;  %v21_v9 = vld [vmem:[%s191_s1] sm:$0xff]  ;;  %v63_v10 = vld [vmem:[%s192_s3 + $0x18] sm:$0xff]  ;;  %v62_v12 = vld [vmem:[%s192_s3 + $0x10] sm:$0xff] }
   0x5   :  { %85 = vmatpush.msra.mxu1 %v66_v4  ;;  %v20_v11 = vld [vmem:[%s194_s0] sm:$0xff]  ;;  %v61_v13 = vld [vmem:[%s192_s3 + $0x8] sm:$0xff] }
   0x6   :  { %51 = vmatpush.msra.mxu0 %v24_v2  ;;  %v60_v14 = vld [vmem:[%s192_s3] sm:$0xff] }
   0x7   :  { %86 = vmatpush.msra.mxu1 %v65_v6  ;;  %v105_v15 = vld [vmem:[%s193_s2] ss:$0 sm:$0xff] }
   0x8   :  { %52 = vmatpush.msra.mxu0 %v23_v5  ;;  %v106_v19 = vld [vmem:[%s195_s4] ss:$0 sm:$0xff] }
   0x9   :  { %87 = vmatpush.msra.mxu1 %v64_v8 }
   0xa   :  { %53 = vmatpush.msra.mxu0 %v22_v7 }
   0xb   :  { %88 = vmatpush.msra.mxu1 %v63_v10 }
   0xc   :  { %54 = vmatpush.msra.mxu0 %v21_v9 }
   0xd   :  { %103 = vmatmul.msk.f32.vlgmr.msra.gmra.mxu0 %vm31_vm1, %v20_v11  ;;  %89 = vmatpush.msra.mxu1 %v62_v12 }
   0xf   :  { %90 = vmatpush.msra.mxu1 %v61_v13 }
  0x11   :  { %91 = vmatpush.msra.mxu1 %v60_v14 }
  0x8a   :  { %v56_v16 = vpop.f32.mrf.mxu0 }
  0x8b   :  { %v57_v17 = vadd.f32 %v105_v15, %v56_v16 }
  0x8d   :  { %v59_v18 = vmax.f32 %v57_v17, 0.0 }
  0x8f   :  { %104 = vmatmul.msk.f32.vlgmr.msra.gmra.mxu1 %vm72_vm2, %v59_v18 }
 0x10c   :  { %v93_v20 = vpop.f32.mrf.mxu1 }
 0x10d   :  { %v94_v21 = vadd.f32 %v106_v19, %v93_v20 }
 0x10f   :  { %97 = vst.msk [vmem:[%s196_s5] sm:$0xff] %vm96_vm3, %v94_v21 }

</bundles_post_ra>
